<compile_context>
chip_gen: v7x
topology: tpu7x:2x2x1
jax: 0.10.0
libtpu: 0.0.40
codegen_flags: <defaults>
</compile_context>

<pallas_src>
import functools

import jax
import jax.numpy as jnp
from jax.experimental import pallas as pl
from jax.experimental.pallas import tpu as pltpu


# ---------------------------------------------------------------------------
# Tile-size helpers (no padding: chosen blocks always divide the array dims).
# ---------------------------------------------------------------------------
def _pick_lane_block(dim, target=2048, align=128):
    """Largest multiple of `align` <= target that divides `dim`, else full dim."""
    if dim <= align:
        return dim
    b = min(dim, target)
    b -= b % align
    while b >= align:
        if dim % b == 0:
            return b
        b -= align
    return dim


def _pick_row_block(rows, cols, itemsize, target_bytes=2 << 20):
    """Row block that divides `rows`, is a multiple of 8 (or full), ~target_bytes."""
    if rows <= 8:
        return rows
    tgt = max(8, target_bytes // max(1, cols * itemsize))
    bm = min(rows, tgt)
    bm -= bm % 8
    bm = max(bm, 8)
    while bm > 8 and rows % bm != 0:
        bm -= 8
    if rows % bm != 0:
        bm = rows  # full dim is always a legal block
    # Prefer >= 2 grid steps so both v7x TensorCores get work.
    if bm == rows and rows >= 16 and (rows // 2) % 8 == 0:
        bm = rows // 2
    return bm


# ---------------------------------------------------------------------------
# Generic residual add: out = x + fx (Pallas kernel over a lane-dense slab).
# ---------------------------------------------------------------------------
def _residual_add_kernel(x_ref, fx_ref, o_ref):
    o_ref[...] = x_ref[...] + fx_ref[...]


def residual_add_pallas(x, fx):
    """Elementwise x + fx over a lane-dense 2D view (free reshapes only)."""
    assert x.shape == fx.shape, (x.shape, fx.shape)
    fx = fx.astype(x.dtype)
    orig_shape = x.shape
    total = x.size
    itemsize = x.dtype.itemsize

    # Lane-dense 2D view of the contiguous data: cols a multiple of 128 when
    # possible, while keeping >= 8 rows to fill the (8, 128) vreg tile.
    cols = 0
    c = 128
    while c <= 4096 and total % c == 0:
        cols = c
        c *= 2
    if cols:
        while cols > 128 and total // cols < 8:
            cols //= 2
        rows = total // cols
    else:  # fallback: collapse leading dims, keep the last one on lanes
        cols = orig_shape[-1] if len(orig_shape) > 1 else total
        rows = total // cols

    x2 = x.reshape(rows, cols)
    fx2 = fx.reshape(rows, cols)

    bm = _pick_row_block(rows, cols, itemsize)
    bc = _pick_lane_block(cols, target=4096)
    grid = (rows // bm, cols // bc)

    out = pl.pallas_call(
        _residual_add_kernel,
        out_shape=jax.ShapeDtypeStruct((rows, cols), x.dtype),
        grid=grid,
        in_specs=[
            pl.BlockSpec((bm, bc), lambda i, j: (i, j)),
            pl.BlockSpec((bm, bc), lambda i, j: (i, j)),
        ],
        out_specs=pl.BlockSpec((bm, bc), lambda i, j: (i, j)),
        compiler_params=pltpu.CompilerParams(
            dimension_semantics=("parallel", "parallel")),
    )(x2, fx2)
    return out.reshape(orig_shape)


class Residual:
    """Pallas port of the PyTorch Residual module: forward(x) = x + fn(x).

    If `fn` exposes a `fused_residual(x, ...)` method, the residual addition
    is fused into fn's own Pallas kernel (single HBM read of x, single write).
    Otherwise fn runs as regular JAX and the addition is a Pallas kernel.
    """

    def __init__(self, fn):
        self.fn = fn

    def __call__(self, x, *args, **kwargs):
        fused = getattr(self.fn, "fused_residual", None)
        if fused is not None:
            return fused(x, *args, **kwargs)
        # TODO(synk): arbitrary `fn` callables run as regular JAX; only the
        # residual addition is lowered generically to Pallas.
        return residual_add_pallas(x, self.fn(x, *args, **kwargs))


# ---------------------------------------------------------------------------
# Demo fn: RMSNorm (F.normalize(x, dim=1) * g * sqrt(C)), with an optional
# residual fused into the same kernel.
# ---------------------------------------------------------------------------
def _rmsnorm_kernel(x_ref, g_ref, o_ref, *, eps, add_residual):
    # x_ref: (1, C, bc) block (NCHW kept; H*W on the lane axis).
    # g_ref: (1, C, 1) with sqrt(C) already folded in.
    x = x_ref[...].astype(jnp.float32)
    g = g_ref[...].astype(jnp.float32)
    sq = jnp.sum(x * x, axis=1, keepdims=True)         # (1, 1, bc) sublane reduce
    inv = 1.0 / jnp.maximum(jnp.sqrt(sq), eps)          # per-column, not per-elem
    y = x * inv * g
    if add_residual:
        y = y + x                                       # fused: out = x + fn(x)
    o_ref[...] = y.astype(o_ref.dtype)


def _rmsnorm_call(x, g, *, eps, lane_block, add_residual):
    """x: (N, C, H, W) NCHW, g: (1, C, 1, 1).  Returns (N, C, H, W)."""
    N, C, H, W = x.shape
    HW = H * W
    x3 = x.reshape(N, C, HW)                            # free reshape, stays NCHW
    g3 = (g.reshape(1, C, 1) * (float(C) ** 0.5)).astype(jnp.float32)

    bc = _pick_lane_block(HW, target=lane_block)
    grid = (N, HW // bc)

    out = pl.pallas_call(
        functools.partial(_rmsnorm_kernel, eps=eps, add_residual=add_residual),
        out_shape=jax.ShapeDtypeStruct((N, C, HW), x.dtype),
        grid=grid,
        in_specs=[
            pl.BlockSpec((1, C, bc), lambda n, j: (n, 0, j)),
            pl.BlockSpec((1, C, 1), lambda n, j: (0, 0, 0)),
        ],
        out_specs=pl.BlockSpec((1, C, bc), lambda n, j: (n, 0, j)),
        compiler_params=pltpu.CompilerParams(
            dimension_semantics=("parallel", "parallel")),
    )(x3, g3)
    return out.reshape(N, C, H, W)


class RMSNormPallas:
    """fn for the demo: RMSNorm in Pallas, with a fused-residual fast path."""

    def __init__(self, g, eps=1e-12, lane_block=2048):
        self.g = g
        self.eps = eps
        self.lane_block = lane_block

    def __call__(self, x):
        return _rmsnorm_call(x, self.g, eps=self.eps,
                             lane_block=self.lane_block, add_residual=False)

    def fused_residual(self, x):
        return _rmsnorm_call(x, self.g, eps=self.eps,
                             lane_block=self.lane_block, add_residual=True)


def rmsnorm_ref(x, g, eps=1e-12):
    C = x.shape[1]
    norm = jnp.sqrt(jnp.sum(x.astype(jnp.float32) ** 2, axis=1, keepdims=True))
    return (x / jnp.maximum(norm, eps)) * g * (float(C) ** 0.5)


if __name__ == "__main__":
    key = jax.random.PRNGKey(0)
    N, C, H, W = 2, 4, 16, 16
    x = jax.random.normal(key, (N, C, H, W), dtype=jnp.float32)
    g = jnp.ones((1, C, 1, 1), dtype=jnp.float32)  # nn.Parameter(torch.ones(1,C,1,1))

    # Path 1 (fused): Residual wrapping a Pallas RMSNorm -> single-pass kernel.
    block = Residual(RMSNormPallas(g))
    out_fused = jax.block_until_ready(block(x))
    ref_fused = x + rmsnorm_ref(x, g)
    assert out_fused.shape == (N, C, H, W)
    assert jnp.allclose(out_fused, ref_fused, atol=1e-5, rtol=1e-5), \
        "fused residual mismatch vs reference"

    # Path 2 (generic): Residual wrapping an arbitrary JAX callable; the
    # residual addition itself is the Pallas kernel.
    generic = Residual(lambda t: jnp.tanh(t) * 0.5)
    out_generic = jax.block_until_ready(generic(x))
    ref_generic = x + jnp.tanh(x) * 0.5
    assert jnp.allclose(out_generic, ref_generic, atol=1e-5, rtol=1e-5), \
        "generic residual mismatch vs reference"

    print("KERNEL_OK")
</pallas_src>

<mosaic_0001>
module attributes {stable_mosaic.version = 11 : i64} {
  func.func @_rmsnorm_kernel(%arg0: i32, %arg1: i32, %arg2: memref<1x4x256xf32, #tpu.memory_space<vmem>>, %arg3: memref<1x4x1xf32, #tpu.memory_space<vmem>>, %arg4: memref<1x4x256xf32, #tpu.memory_space<vmem>>) attributes {dimension_semantics = [#tpu.dimension_semantics<parallel>, #tpu.dimension_semantics<parallel>], iteration_bounds = array<i64: 2, 1>, scalar_prefetch = 0 : i64, scratch_operands = 0 : i64, tpu.core_type = #tpu.core_type<tc>, window_params = [{transform_indices = @transform_0, window_bounds = array<i64: 1, 4, 256>}, {pipeline_mode = #tpu.pipeline_mode<synchronous>, transform_indices = @transform_1, window_bounds = array<i64: 1, 4, 1>}, {transform_indices = @transform_2, window_bounds = array<i64: 1, 4, 256>}]} {
    %c0 = arith.constant 0 : index
    %c0_0 = arith.constant 0 : index
    %c0_1 = arith.constant 0 : index
    %0 = vector.load %arg2[%c0, %c0_0, %c0_1] : memref<1x4x256xf32, #tpu.memory_space<vmem>>, vector<1x4x256xf32>
    %c0_2 = arith.constant 0 : index
    %c0_3 = arith.constant 0 : index
    %c0_4 = arith.constant 0 : index
    %1 = vector.load %arg3[%c0_2, %c0_3, %c0_4] : memref<1x4x1xf32, #tpu.memory_space<vmem>>, vector<1x4x1xf32>
    %2 = arith.mulf %0, %0 : vector<1x4x256xf32>
    %cst = arith.constant dense<0.000000e+00> : vector<1x256xf32>
    %3 = vector.multi_reduction <add>, %2, %cst [1] : vector<1x4x256xf32> to vector<1x256xf32>
    %4 = vector.shape_cast %3 : vector<1x256xf32> to vector<1x1x256xf32>
    %5 = math.sqrt %4 : vector<1x1x256xf32>
    %cst_5 = arith.constant 9.99999996E-13 : f32
    %6 = vector.broadcast %cst_5 : f32 to vector<1x1x256xf32>
    %7 = arith.maximumf %5, %6 : vector<1x1x256xf32>
    %cst_6 = arith.constant 1.000000e+00 : f32
    %8 = vector.broadcast %cst_6 : f32 to vector<1x1x256xf32>
    %9 = arith.divf %8, %7 : vector<1x1x256xf32>
    %10 = vector.broadcast %9 : vector<1x1x256xf32> to vector<1x4x256xf32>
    %11 = arith.mulf %0, %10 : vector<1x4x256xf32>
    %12 = vector.broadcast %1 : vector<1x4x1xf32> to vector<1x4x256xf32>
    %13 = arith.mulf %11, %12 : vector<1x4x256xf32>
    %14 = arith.addf %13, %0 : vector<1x4x256xf32>
    %c0_7 = arith.constant 0 : index
    %c0_8 = arith.constant 0 : index
    %c0_9 = arith.constant 0 : index
    %15 = vector.load %arg4[%c0_7, %c0_8, %c0_9] : memref<1x4x256xf32, #tpu.memory_space<vmem>>, vector<1x4x256xf32>
    tpu.vector_store %arg4[%c0_7, %c0_8, %c0_9], %14 {strides = array<i32>} : memref<1x4x256xf32, #tpu.memory_space<vmem>>, vector<1x4x256xf32>,
    return
  }
  func.func @transform_0(%arg0: i32, %arg1: i32) -> (i32, i32, i32) {
    %c0_i32 = arith.constant 0 : i32
    %c0_i32_0 = arith.constant 0 : i32
    return %arg0, %c0_i32, %arg1 : i32, i32, i32
  }
  func.func @transform_1(%arg0: i32, %arg1: i32) -> (i32, i32, i32) {
    %c0_i32 = arith.constant 0 : i32
    %c0_i32_0 = arith.constant 0 : i32
    %c0_i32_1 = arith.constant 0 : i32
    %c0_i32_2 = arith.constant 0 : i32
    return %c0_i32, %c0_i32_0, %c0_i32_1 : i32, i32, i32
  }
  func.func @transform_2(%arg0: i32, %arg1: i32) -> (i32, i32, i32) {
    %c0_i32 = arith.constant 0 : i32
    %c0_i32_0 = arith.constant 0 : i32
    return %arg0, %c0_i32, %arg1 : i32, i32, i32
  }
}

</mosaic_0001>

<bundles_post_ra>
// kernel: tpu_custom_call.1
= control target key start
LH: loop header
LB: loop body
LE: loop exit
PB: predicated region body
PF: predicated region fallthrough
CT: control target
= control target key end

     0   :  { %7 = vsyncpa [#allocation3], 0  ;;  %s744_s0 = inlined_call_operand.hbm [shape: f32[2,4,256], index: 0, kind: input, shape index: {}]   ;;  %s745_s1 = inlined_call_operand.vmem [shape: f32[1,4,1], index: 1, kind: input, shape index: {}]   ;;  %s746_s2 = inlined_call_operand.hbm [shape: f32[2,4,256], index: 2, kind: output, shape index: {}]  }
   0x1   :  { %9 = vsyncpa [#allocation3 + $0x1], 0 }
   0x2   :  { %10 = vsyncpa [#allocation4], 0 }
   0x3   :  { %12 = vsyncpa [#allocation4 + $0x1], 0  ;;  %s565_s9 = smov 0   ;;  %s567_s10 = smov 0  }
   0x4   :  { %s569_s11 = smov 0   ;;  %s571_s12 = smov 0  }
   0x5   :  { %s573_s13 = smov 0   ;;  %s575_s14 = smov 0  }
   0x6 LB: > { %s342_s15 = sadd.s32 4294967295, %s544_s14   ;;  %s343_s16 = sadd.s32 4294967294, %s544_s14   ;;  %s544_s14 = sphi %s575_s14, %s18_s14   ;;  %s540_s13 = sphi %s573_s13, %s762_s13   ;;  %s536_s12 = sphi %s571_s12, %s761_s12   ;;  %s532_s11 = sphi %s569_s11, %s760_s11   ;;  %s528_s10 = sphi %s567_s10, %s759_s10   ;;  %s524_s9 = sphi %s565_s9, %s758_s9  }
   0x7   : > { %s30_s17 = sadd.s32 1, %s540_s13  ;;  %s39_s18 = sadd.s32 1, %s532_s11 }
   0x8   : > { %p32_p0 = scmp.ge.s32.totalorder %s30_s17, 2  ;;  %p46_p1 = scmp.ne.s32.totalorder %s532_s11, %s528_s10 }
   0x9   : > { %p47_p2 = scmp.eq.s32.totalorder %s544_s14, 0  ;;  %p52_p3 = scmp.ne.s32.totalorder %s528_s10, %s524_s9 }
   0xa   : > { %s764_s17 = smov (%p32_p0, %s30_s17), 0  ;;  %p53_p5 = scmp.eq.s32.totalorder %s342_s15, 0 }
   0xb   : > { %p606_p4 = por %p47_p2, %p46_p1  ;;  %s34_s20 = ssub.s32 %s540_s13, %s764_s17 }
   0xc   : > { %p99_p6 = scmp.eq.s32.totalorder %s342_s15, 1  ;;  %p37_p7 = scmp.eq.s32.totalorder %s34_s20, 0 }
   0xd   : > { %p612_p8 = por %p53_p5, %p52_p3  ;;  %p105_p10 = scmp.eq.s32.totalorder %s343_s16, 1 }
   0xe   : > { %p616_p9 = por %p99_p6, %p46_p1  ;;  %p371_p13 = scmp.lt.s32.totalorder %s544_s14, 2 }
   0xf   : > { %s621_s23 = scalar_select %p37_p7, %s532_s11, %s39_s18  }
  0x10   : > { %s750_s22 = scalar_select %p616_p9, 1, 0 }
  0x11   : > { %p623_p11 = por %p105_p10, %p52_p3  ;;  %s128_s25 = sand.u32 1, %s532_s11  }
  0x12   : > { %s346_s26 = sshll.u32 %s128_s25, 3  ;;  %s357_s27 = sshll.u32 %s540_s13, 7 }
  0x13   : > { %s751_s24 = scalar_select %p623_p11, 1, 0 }
  0x14   : > { %s634_s30 = scalar_lea.hbm %s744_s0, %s357_s27  ;;  %s132_s3 = scalar_lea.vmem [#allocation2], %s346_s26 }
  0x15   : > { %s142_s4 = sshll.u32 %s132_s3, 4  ;;  %p640_p0 = pnand %p371_p13, %p606_p4  ;;  %s636_s4 = int_to_ptr.vmem [resolvable:$true] %s142_s4 }
  0x16   : > { %s129_s6 = scalar_lea.sflag [#allocation3], %s128_s25  ;;  %s432_s7 = scalar_lea.hbm %s634_s30, 128 }
  0x17   : > { %p433_p3 = scmp.ne.s32.totalorder %s634_s30, %s432_s7  ;;  %p434_p5 = pneg %p640_p0 }
  0x18   : > { %s437_s16 = scalar_lea.hbm %s744_s0, 256  ;;  %p438_p4 = scmp.lt.u32.totalorder %s634_s30, %s744_s0 }
  0x19   : > { %p435_p6 = pnand %p434_p5, %p433_p3  ;;  %p439_p10 = scmp.lt.u32.totalorder %s437_s16, %s432_s7 }
  0x1a   : > { %p441_p12 = scmp.lt.u32.totalorder %s432_s7, %s634_s30 }
  0x1b   : > { %p436_p7 = pneg %p435_p6  ;;  %p440_p13 = por %p439_p10, %p438_p4 }
  0x1d   : > { %p442_p1 = por %p441_p12, %p440_p13 }
  0x1f   : > { %p443_p2 = pnand %p442_p1, %p436_p7 }
  0x21   : > { %446 = shalt.err (!%p443_p2)
}
  0x22   : > { %s447_s20 = scalar_lea.vmem %s636_s4, 128  ;;  %s546_s25 = smov [#allocation2]  }
  0x23   : > { %p448_p3 = scmp.ne.s32.totalorder %s636_s4, %s447_s20  ;;  %s452_s26 = sshll.u32 %s546_s25, 4  ;;  %s453_s26 = int_to_ptr.vmem [resolvable:$false] %s452_s26 }
  0x24   : > { %s454_s27 = scalar_lea.vmem %s453_s26, 256  ;;  %p455_p9 = scmp.lt.s32.totalorder %s636_s4, %s453_s26 }
  0x25   : > { %p450_p6 = pnand %p448_p3, %p434_p5  ;;  %p456_p4 = scmp.lt.s32.totalorder %s454_s27, %s447_s20 }
  0x27   : > { %p451_p11 = pneg %p450_p6  ;;  %p457_p10 = por %p456_p4, %p455_p9 }
  0x29   : > { %p458_p12 = pnand %p457_p10, %p451_p11 }
  0x2b   : > { %461 = shalt.err (!%p458_p12)
}
  0x2c   : > { %366 = dma.hbm_to_vmem [thread:$0]  (!%p640_p0), %s634_s30, 128, %s636_s4, %s129_s6  }
  0x2d   : > { %p753_p1 = scmp.lt.s32.totalorder %s544_s14, 3  ;;  %p754_p2 = scmp.ge.s32.totalorder %s544_s14, 1 }
  0x2f   : > { %p148_p5 = pnand %p754_p2, %p753_p1 }
  0x30   : > { %s676_s28 = sand.u32 (!%p148_p5), 1, %s528_s10  }
  0x31   : > { %151 = sbr.rel (%p148_p5) target bundleno = 207 (0xcf), region = 28  ;;  %s350_s29 = sshll.u32 (!%p148_p5), %s676_s28, 3 }
  0x32   : > { %s154_s3 = scalar_lea.sflag (!%p148_p5), [#allocation3], %s676_s28  ;;  %s157_s5 = scalar_lea.vmem (!%p148_p5), [#allocation2], %s350_s29 }
  0x38   : > { %515 = dma.done.wait (%p612_p8), %s154_s3, 128  }
  0x39   : > { %517 = vsyncadd (%p612_p8), %s154_s3, 4294967168  ;;  %v547_v0 = vmov 0   ;;  %v181_v1 = vld [vmem:[%s745_s1] sm:$0xf]  ;;  %vm186_vm0 = vcmask 1043456   ;;  %v233_v33 = vlaneseq  ;;  %s358_s21 = sshll.u32 %s536_s12, 7 }
  0x3a   : > { %423 = vset.pattern.permute.xlu0 %v547_v0  ;;  %v180_v2 = vld [vmem:[%s157_s5] sm:$0xff]  ;;  %v548_v31 = vmov 839922192   ;;  %s177_s6 = scalar_lea.vmem [#allocation5], %s350_s29  ;;  %s695_s16 = scalar_lea.hbm %s746_s2, %s358_s21 }
  0x3b   : > { %228 = vperm.xlu0 %423, %v181_v1   ;;  %v182_v3 = vmul.f32 %v180_v2, %v180_v2  ;;  %v231_v32 = vunpack.c.l.s4 %v548_v31  ;;  %v234_v37 = vshrl.u32 %v233_v33, 7  ;;  %s258_s7 = sshll.u32 %s177_s6, 4  ;;  %s242_s18 = scalar_lea.sflag [#allocation4], %s676_s28  ;;  %s697_s7 = int_to_ptr.vmem [resolvable:$true] %s258_s7 }
  0x3c   : > { %s462_s19 = scalar_lea.vmem %s697_s7, 128  ;;  %p755_p9 = scmp.ne.s32.totalorder %s750_s22, 0 }
  0x3d   : > { %v184_v4 = vcombine.high %v182_v3, %v182_v3  ;;  %v187_v5 = vsel %vm186_vm0, %v182_v3, 0.0  ;;  %v232_v36 = vunpack.c.0.s8 %v231_v32  ;;  %p463_p8 = scmp.ne.s32.totalorder %s697_s7, %s462_s19  ;;  %s549_s12 = smov [#allocation5]  }
  0x3e   : > { %v188_v7 = vrot.slane %v187_v5, 4  ;;  %s466_s20 = sshll.u32 %s549_s12, 4  ;;  %s467_s20 = int_to_ptr.vmem [resolvable:$false] %s466_s20 }
  0x3f   : > { %v194_v6 = vsel %vm186_vm0, %v184_v4, 0.0  ;;  %v235_v39 = vsub.s32 %v232_v36, %v234_v37  ;;  %p464_p11 = pnand %p463_p8, %p755_p9  ;;  %s468_s25 = scalar_lea.vmem %s467_s20, 256 }
  0x40   : > { %v195_v8 = vrot.slane %v194_v6, 4  ;;  %v189_v9 = vadd.f32 %v188_v7, %v187_v5  ;;  %p469_p7 = scmp.lt.s32.totalorder %s697_s7, %s467_s20  ;;  %p470_p13 = scmp.lt.s32.totalorder %s468_s25, %s462_s19 }
  0x41   : > { %p465_p0 = pneg %p464_p11 }
  0x42   : > { %v196_v10 = vadd.f32 %v195_v8, %v194_v6  ;;  %v190_v11 = vrot.slane %v189_v9, 2  ;;  %p471_p3 = por %p470_p13, %p469_p7 }
  0x44   : > { %v197_v12 = vrot.slane %v196_v10, 2  ;;  %v191_v13 = vadd.f32 %v190_v11, %v189_v9  ;;  %p472_p6 = pnand %p471_p3, %p465_p0 }
  0x46   : > { %v198_v14 = vadd.f32 %v197_v12, %v196_v10  ;;  %v192_v15 = vrot.slane %v191_v13, 1 }
  0x48   : > { %v199_v16 = vrot.slane %v198_v14, 1  ;;  %v193_v17 = vadd.f32 %v192_v15, %v191_v13 }
  0x4a   : > { %v200_v18 = vadd.f32 %v199_v16, %v198_v14  ;;  %424 = vrsqrt.f32 %v193_v17  ;;  %vm203_vm1 = vcmp.eq.f32.partialorder %v193_v17, inf  ;;  %v206_v23 = vand.u32 2147483648, %v193_v17 }
  0x4b   : > { %vm205_vm3 = vcmp.eq.f32.partialorder %v193_v17, 0.0 }
  0x4c   : > { %426 = vrsqrt.f32 %v200_v18  ;;  %vm210_vm2 = vcmp.eq.f32.partialorder %v200_v18, inf  ;;  %v213_v25 = vand.u32 2147483648, %v200_v18  ;;  %vm212_vm4 = vcmp.eq.f32.partialorder %v200_v18, 0.0 }
  0x54   : > { %v425_v19 = vpop.eup %424 }
  0x55   : > { %v202_v21 = vmul.f32 %v425_v19, %v193_v17 }
  0x56   : > { %v427_v20 = vpop.eup %426 }
  0x57   : > { %v209_v22 = vmul.f32 %v427_v20, %v200_v18  ;;  %v204_v24 = vsel %vm203_vm1, %v193_v17, %v202_v21 }
  0x58   : > { %v207_v27 = vsel %vm205_vm3, %v206_v23, %v204_v24 }
  0x59   : > { %v211_v26 = vsel %vm210_vm2, %v200_v18, %v209_v22  ;;  %v215_v29 = vmax.f32 %v207_v27, 1e-12 }
  0x5a   : > { %v214_v28 = vsel %vm212_vm4, %v213_v25, %v211_v26 }
  0x5b   : > { %v216_v30 = vmax.f32 %v214_v28, 1e-12  ;;  %428 = vrcp.f32 %v215_v29 }
  0x5d   : > { %430 = vrcp.f32 %v216_v30 }
  0x65   : > { %v429_v34 = vpop.eup %428 }
  0x67   : > { %v431_v35 = vpop.eup %430 }
  0x68   : > { %v223_v38 = vcombine.low %v429_v34, %v431_v35 }
  0x6a   : > { %v225_v40 = vmul.f32 %v223_v38, %v180_v2 }
  0xba   : > { %v229_v41 = vpop.permute.xlu0 %228 }
  0xbb   : > { %v236_v42 = vrot.slane %v229_v41, %v235_v39 }
  0xbd   : > { %v238_v43 = vmul.f32 %v236_v42, %v225_v40 }
  0xbf   : > { %v239_v44 = vadd.f32 %v238_v43, %v180_v2 }
  0xc1   : > { %240 = vst [vmem:[%s177_s6] sm:$0xff] %v239_v44 }
  0xc2   : > { %475 = shalt.err (!%p472_p6)
}
  0xc3   : > { %s476_s26 = scalar_lea.hbm %s695_s16, 128  ;;  %s480_s29 = scalar_lea.hbm %s746_s2, 256 }
  0xc4   : > { %p477_p4 = scmp.ne.s32.totalorder %s695_s16, %s476_s26  ;;  %p481_p1 = scmp.lt.u32.totalorder %s695_s16, %s746_s2 }
  0xc5   : > { %p482_p2 = scmp.lt.u32.totalorder %s480_s29, %s476_s26  ;;  %p484_p8 = scmp.lt.u32.totalorder %s476_s26, %s695_s16 }
  0xc6   : > { %p478_p10 = pnand %p477_p4, %p755_p9 }
  0xc7   : > { %p483_p5 = por %p482_p2, %p481_p1 }
  0xc8   : > { %p479_p12 = pneg %p478_p10 }
  0xc9   : > { %p485_p11 = por %p484_p8, %p483_p5 }
  0xcb   : > { %p486_p0 = pnand %p485_p11, %p479_p12 }
  0xcd   : > { %489 = shalt.err (!%p486_p0)
}
  0xce   : > { %361 = dma.vmem_to_hbm [thread:$0]  (%p755_p9), %s697_s7, 128, %s695_s16, %s242_s18  }
  0xcf PF: > { %s270_s30 = sand.u32 1, %s524_s9   ;;  %p756_p7 = scmp.ne.s32.totalorder %s751_s24, 0 }
  0xd0   : > { %p757_p13 = scmp.ge.s32.totalorder %s544_s14, 2  ;;  %s271_s4 = scalar_lea.sflag [#allocation4], %s270_s30 }
  0xd2   : > { %p368_p3 = pnand %p757_p13, %p756_p7 }
  0xd4   : > { %519 = dma.done.wait (!%p368_p3), %s271_s4, 128  }
  0xd5   : > { %521 = vsyncadd (!%p368_p3), %s271_s4, 4294967168  ;;  %s18_s14 = sadd.s32 1, %s544_s14   ;;  %s758_s9 = smov %s528_s10 }
  0xd6   : > { %p15_p6 = scmp.ge.s32.totalorder %s18_s14, 4   ;;  %s759_s10 = smov %s532_s11 }
  0xd7   : > { %s760_s11 = smov %s621_s23  ;;  %s761_s12 = smov %s540_s13 }
  0xd8   : > { %s762_s13 = smov %s764_s17  ;;  %17 = sbr.rel (!%p15_p6) target bundleno = 6 (0x6), region = 73 }
  0xdf   :  { %276 = vsyncpa [#allocation3], 1 }
  0xe0   :  { %278 = vsyncpa [#allocation3 + $0x1], 1 }
  0xe1   :  { %279 = vsyncpa [#allocation4], 1 }
  0xe2   :  { %281 = vsyncpa [#allocation4 + $0x1], 1 }

</bundles_post_ra>
